<compile_context>
chip_gen: v7x
topology: tpu7x:2x2x1
jax: 0.10.0
libtpu: 0.0.40
codegen_flags: <defaults>
</compile_context>

<pallas_src>
import functools

import jax
import jax.numpy as jnp
from jax.experimental import pallas as pl
from jax.experimental.pallas import tpu as pltpu


_VMEM_LIMIT = 40 * 1024 * 1024   # fits double-buffered worst-case tiles on v5e/v6e/v7x


# ---------------------------------------------------------------- helpers
def _ceil_to(x, m):
    return ((x + m - 1) // m) * m


def _ceil128(x):
    return _ceil_to(x, 128)


def _mp_of(m):
    # bf16 packs two rows per sublane -> pad the row dim to a multiple of 16.
    return max(16, _ceil_to(m, 16))


def _pad_m(a, mp):
    m = a.shape[0]
    if m == mp:
        return a
    return jnp.pad(a, ((0, mp - m),) + ((0, 0),) * (a.ndim - 1))


class _KeyGen:
    def __init__(self, key):
        self.key = key

    def __call__(self):
        self.key, sub = jax.random.split(self.key)
        return sub


# ================================================================ plain fused matmul
# A:(Mp,Kp) bf16 x B:(Kp,Np) bf16 (BN scale pre-folded) + shift:(1,Np) f32 -> bf16.
# Whole K in one step; N split into >=2 "parallel" steps when Np >= 256 (v7x megacore).
@functools.lru_cache(maxsize=None)
def _matmul_call(Mp, Kp, Np, tn, relu):
    def kernel(a_ref, b_ref, s_ref, o_ref):
        y = jnp.dot(a_ref[...], b_ref[...], preferred_element_type=jnp.float32)
        y = y + s_ref[...]
        if relu:
            y = jnp.maximum(y, 0.0)
        o_ref[...] = y.astype(o_ref.dtype)

    return pl.pallas_call(
        kernel,
        out_shape=jax.ShapeDtypeStruct((Mp, Np), jnp.bfloat16),
        grid_spec=pltpu.PrefetchScalarGridSpec(
            num_scalar_prefetch=0,
            grid=(Np // tn,),
            in_specs=[
                pl.BlockSpec((Mp, Kp), lambda j: (0, 0)),
                pl.BlockSpec((Kp, tn), lambda j: (0, j)),
                pl.BlockSpec((1, tn), lambda j: (0, j)),
            ],
            out_specs=pl.BlockSpec((Mp, tn), lambda j: (0, j)),
        ),
        compiler_params=pltpu.CompilerParams(
            dimension_semantics=("parallel",),
            vmem_limit_bytes=_VMEM_LIMIT,
        ),
    )


def run_matmul(a2d, pack, relu):
    """a2d:(M,K) -> (M, Np) bf16 = act(a2d @ pack['b'] + pack['s'])."""
    M, K = a2d.shape
    Kp, Np = pack["b"].shape
    Mp = _mp_of(M)
    if a2d.dtype != jnp.bfloat16:
        a2d = a2d.astype(jnp.bfloat16)
    if K != Kp or M != Mp:
        a2d = jnp.pad(a2d, ((0, Mp - M), (0, Kp - K)))
    out = _matmul_call(Mp, Kp, Np, pack["tn"], bool(relu))(a2d, pack["b"], pack["s"])
    return out[:M] if Mp != M else out


# ================================================================ fused conv2+conv3+residual
# Per bottleneck: grouped/dense 3x3 conv2 (block-diagonal chunk matmuls, weights resident
# in VMEM) -> +shift -> ReLU -> 1x1 conv3 (weights streamed over an N grid) -> +shift
# -> +residual -> ReLU.  The wide intermediate activation h2 never leaves the chip.
@functools.lru_cache(maxsize=None)
def _conv23_call(Cn, Mp, Kc, cwo, Wp, Coutp, tn):
    def kernel(p_ref, w2_ref, s2_ref, w3_ref, s3_ref, r_ref, o_ref):
        acc = s3_ref[...] + r_ref[...].astype(jnp.float32)
        for c in range(Cn):
            h2 = jnp.dot(p_ref[c], w2_ref[c], preferred_element_type=jnp.float32)
            h2 = jnp.maximum(h2 + s2_ref[c], 0.0).astype(jnp.bfloat16)
            acc = acc + jnp.dot(h2, w3_ref[c * cwo:(c + 1) * cwo, :],
                                preferred_element_type=jnp.float32)
        o_ref[...] = jnp.maximum(acc, 0.0).astype(o_ref.dtype)

    return pl.pallas_call(
        kernel,
        out_shape=jax.ShapeDtypeStruct((Mp, Coutp), jnp.bfloat16),
        grid_spec=pltpu.PrefetchScalarGridSpec(
            num_scalar_prefetch=0,
            grid=(Coutp // tn,),
            in_specs=[
                pl.BlockSpec((Cn, Mp, Kc), lambda j: (0, 0, 0)),   # im2col patch chunks
                pl.BlockSpec((Cn, Kc, cwo), lambda j: (0, 0, 0)),  # conv2 packed weights
                pl.BlockSpec((Cn, 1, cwo), lambda j: (0, 0, 0)),   # conv2 BN shift
                pl.BlockSpec((Wp, tn), lambda j: (0, j)),          # conv3 weights (streamed)
                pl.BlockSpec((1, tn), lambda j: (0, j)),           # conv3 BN shift
                pl.BlockSpec((Mp, tn), lambda j: (0, j)),          # residual
            ],
            out_specs=pl.BlockSpec((Mp, tn), lambda j: (0, j)),
        ),
        compiler_params=pltpu.CompilerParams(
            dimension_semantics=("parallel",),
            vmem_limit_bytes=_VMEM_LIMIT,
        ),
    )


# ================================================================ im2col (layout glue only)
def _im2col_taps(x, kh, kw, stride, pad):
    """x:(N,H,W,C) bf16 -> (N*Ho*Wo, kh*kw, C) tap-major patches (zero spatial padding)."""
    N, H, W, C = x.shape
    xp = jnp.pad(x, ((0, 0), (pad, pad), (pad, pad), (0, 0))) if pad else x
    Ho = (H + 2 * pad - kh) // stride + 1
    Wo = (W + 2 * pad - kw) // stride + 1
    cols = []
    for i in range(kh):
        for j in range(kw):
            sl = jax.lax.slice(
                xp, (0, i, j, 0),
                (N, i + (Ho - 1) * stride + 1, j + (Wo - 1) * stride + 1, C),
                (1, stride, stride, 1))
            cols.append(sl.reshape(N * Ho * Wo, 1, C))
    return jnp.concatenate(cols, axis=1), Ho, Wo


# ================================================================ maxpool 3x3 s2 p1
def _maxpool_kernel(x_ref, o_ref, *, taps):
    r = x_ref[0]
    for t in range(1, taps):
        r = jnp.maximum(r, x_ref[t])
    o_ref[...] = r


@functools.lru_cache(maxsize=None)
def _maxpool_call(taps, Mp, Cp):
    return pl.pallas_call(
        functools.partial(_maxpool_kernel, taps=taps),
        out_shape=jax.ShapeDtypeStruct((Mp, Cp), jnp.bfloat16),
    )


def maxpool_3x3_s2_p1(x):
    # Input is post-ReLU (>= 0), so zero spatial padding == -inf padding here.
    N, H, W, C = x.shape
    taps, Ho, Wo = _im2col_taps(x, 3, 3, 2, 1)          # (M, 9, C)
    M = N * Ho * Wo
    Mp = _mp_of(M)
    stacked = _pad_m(jnp.transpose(taps, (1, 0, 2)).reshape(9, M, C).transpose(1, 0, 2), Mp)
    stacked = jnp.transpose(stacked, (1, 0, 2))          # (9, Mp, C)
    out = _maxpool_call(9, Mp, C)(stacked)
    out = out[:M] if Mp != M else out
    return out.reshape(N, Ho, Wo, C)


# ================================================================ pooled fc x2 + fusion head
@functools.lru_cache(maxsize=None)
def _tail_call(Nb, Op, inv1, inv2, act):
    def kernel(x1_ref, x2_ref, wf1_ref, bf1_ref, wf2_ref, bf2_ref,
               wa_ref, wb_ref, bh1_ref, wh2_ref, bh2_ref, o_ref):
        f1 = jnp.sum(x1_ref[...].astype(jnp.float32), axis=1) * inv1
        f2 = jnp.sum(x2_ref[...].astype(jnp.float32), axis=1) * inv2
        z1 = jnp.dot(f1.astype(jnp.bfloat16), wf1_ref[...],
                     preferred_element_type=jnp.float32) + bf1_ref[...]
        z2 = jnp.dot(f2.astype(jnp.bfloat16), wf2_ref[...],
                     preferred_element_type=jnp.float32) + bf2_ref[...]
        h = (jnp.dot(z1.astype(jnp.bfloat16), wa_ref[...],
                     preferred_element_type=jnp.float32)
             + jnp.dot(z2.astype(jnp.bfloat16), wb_ref[...],
                       preferred_element_type=jnp.float32)
             + bh1_ref[...])
        if act == "leaky":
            h = jnp.where(h > 0, h, 0.01 * h)
        elif act == "elu":
            h = jnp.where(h > 0, h, jnp.exp(jnp.minimum(h, 0.0)) - 1.0)
        else:
            h = jnp.maximum(h, 0.0)
        o_ref[...] = jnp.dot(h.astype(jnp.bfloat16), wh2_ref[...],
                             preferred_element_type=jnp.float32) + bh2_ref[...]

    return pl.pallas_call(kernel, out_shape=jax.ShapeDtypeStruct((Nb, Op), jnp.float32))


def tail_forward(x1_maps, x2_maps, params, act):
    """AdaptiveAvgPool + backbone fc (x2) + concat + fc1 + act + fc2, in one kernel."""
    N, H1, W1, C1 = x1_maps.shape
    _, H2, W2, C2 = x2_maps.shape
    Nb = max(8, _ceil_to(N, 8))
    HW1p, HW2p = _mp_of(H1 * W1), _mp_of(H2 * W2)
    a1 = jnp.pad(x1_maps.reshape(N, H1 * W1, C1),
                 ((0, Nb - N), (0, HW1p - H1 * W1), (0, 0)))
    a2 = jnp.pad(x2_maps.reshape(N, H2 * W2, C2),
                 ((0, Nb - N), (0, HW2p - H2 * W2), (0, 0)))
    hp = params["head"]
    out = _tail_call(Nb, hp["Op"], float(1.0 / (H1 * W1)), float(1.0 / (H2 * W2)), act)(
        a1, a2,
        params["cnn"]["fc_w"], params["cnn"]["fc_b"],
        params["cnn2"]["fc_w"], params["cnn2"]["fc_b"],
        hp["wa"], hp["wb"], hp["bh1"], hp["wh2"], hp["bh2"])
    return out[:N, :hp["n_out"]]


# ================================================================ parameter construction
# Everything is BN-folded, transposed, padded, block-diag-packed and bf16-cast HERE, once.
def _rand_conv_bn(kg, cout, cin, kh, kw):
    fan_in = cin * kh * kw
    w = jax.random.normal(kg(), (cout, cin, kh, kw), jnp.float32) * (2.0 / fan_in) ** 0.5
    gamma = 1.0 + 0.1 * jax.random.normal(kg(), (cout,), jnp.float32)
    beta = 0.05 * jax.random.normal(kg(), (cout,), jnp.float32)
    mean = jnp.zeros((cout,), jnp.float32)
    var = jnp.ones((cout,), jnp.float32)
    scale = gamma * jax.lax.rsqrt(var + 1e-5)
    shift = beta - mean * scale
    return w * scale[:, None, None, None], shift     # eval-mode BN folded into the conv


def _plain_pack(kg, cout, cin, kh, kw):
    """Conv + BN prepacked as B:(Kp,Np) bf16 (tap-major K) and shift:(1,Np) f32."""
    w_eff, shift = _rand_conv_bn(kg, cout, cin, kh, kw)
    K = kh * kw * cin
    b = jnp.transpose(w_eff, (2, 3, 1, 0)).reshape(K, cout)
    Kp, Np = _ceil128(K), _ceil128(cout)
    b = jnp.pad(b, ((0, Kp - K), (0, Np - cout))).astype(jnp.bfloat16)
    s = jnp.pad(shift, (0, Np - cout)).reshape(1, Np).astype(jnp.float32)
    tn = Np // 2 if Np >= 256 else Np      # >=2 "parallel" N steps -> both v7x cores
    return {"b": b, "s": s, "tn": tn}


def _conv2_pack(kg, width, groups):
    """3x3 (optionally grouped) conv + BN as per-chunk block-diagonal (9*cw, cwo) packs."""
    cin_g = width // groups
    w_eff, shift = _rand_conv_bn(kg, width, cin_g, 3, 3)
    Wp = _ceil128(width)
    if groups == 1:
        wq = jnp.pad(w_eff, ((0, Wp - width), (0, Wp - width), (0, 0), (0, 0)))
        shift = jnp.pad(shift, (0, Wp - width))
        Gc, Cn, ci, co = 1, 1, Wp, Wp
        wg = wq.reshape(1, 1, co, ci, 3, 3)
    else:
        co = width // groups
        Gc = max(1, 128 // co)
        while groups % Gc:
            Gc -= 1
        Cn = groups // Gc
        ci = cin_g
        wg = w_eff.reshape(Cn, Gc, co, ci, 3, 3)
    # pack[c, (t, gc, ic), (gc', oc)] = w[(c*Gc+gc)*co + oc, ic, t] * (gc == gc')
    wt = jnp.transpose(wg, (0, 1, 4, 5, 3, 2)).reshape(Cn, Gc, 9, ci, co)
    eye = jnp.eye(Gc, dtype=wt.dtype)
    pack = jnp.einsum("cgtio,gh->ctgiho", wt, eye)
    cw, cwo = Gc * ci, Gc * co
    w2 = pack.reshape(Cn, 9 * cw, cwo).astype(jnp.bfloat16)
    s2 = shift.reshape(Cn, 1, cwo).astype(jnp.float32)
    return {"w2": w2, "s2": s2, "Cn": Cn, "cw": cw, "cwo": cwo, "Wp": Wp}


def make_resnet_params(kg, in_ch, layers, groups, base_width, fc_out):
    """torchvision-style ResNet(Bottleneck, layers), first conv taking in_ch channels."""
    expansion = 4
    inplanes = 64
    params = {"stem": _plain_pack(kg, 64, in_ch, 7, 7)}
    all_layers = []
    for planes, nblocks, lstride in zip((64, 128, 256, 512), layers, (1, 2, 2, 2)):
        blocks = []
        for bi in range(nblocks):
            s = lstride if bi == 0 else 1
            width = int(planes * (base_width / 64.0)) * groups
            c2 = _conv2_pack(kg, width, groups)
            c3 = _plain_pack(kg, planes * expansion, width, 1, 1)
            blk = {
                "c1": _plain_pack(kg, width, inplanes, 1, 1),
                "c2": c2,
                "w3": c3["b"], "s3": c3["s"], "tn3": c3["tn"],
                "Coutp": c3["b"].shape[1],
                "stride": s,
            }
            if s != 1 or inplanes != planes * expansion:
                blk["ds"] = _plain_pack(kg, planes * expansion, inplanes, 1, 1)
            blocks.append(blk)
            inplanes = planes * expansion
        all_layers.append(blocks)
    params["layers"] = all_layers
    in_feat = 512 * expansion
    fc_w = jax.random.normal(kg(), (fc_out, in_feat), jnp.float32) * (1.0 / in_feat) ** 0.5
    fc_b = 0.01 * jax.random.normal(kg(), (fc_out,), jnp.float32)
    Fp = _ceil128(fc_out)
    params["fc_w"] = jnp.pad(jnp.transpose(fc_w),
                             ((0, 0), (0, Fp - fc_out))).astype(jnp.bfloat16)
    params["fc_b"] = jnp.pad(fc_b, (0, Fp - fc_out)).reshape(1, Fp).astype(jnp.float32)
    return params


def make_head_params(kg, fc_out, fc_final, num_sources):
    fin = 2 * fc_out
    w1 = jax.random.normal(kg(), (fc_final, fin), jnp.float32) * (1.0 / fin) ** 0.5
    b1 = 0.01 * jax.random.normal(kg(), (fc_final,), jnp.float32)
    w2 = jax.random.normal(kg(), (num_sources, fc_final), jnp.float32) * (1.0 / fc_final) ** 0.5
    b2 = 0.01 * jax.random.normal(kg(), (num_sources,), jnp.float32)
    Fp, Hp, Op = _ceil128(fc_out), _ceil128(fc_final), _ceil128(num_sources)
    wa = jnp.pad(jnp.transpose(w1[:, :fc_out]), ((0, Fp - fc_out), (0, Hp - fc_final)))
    wb = jnp.pad(jnp.transpose(w1[:, fc_out:]), ((0, Fp - fc_out), (0, Hp - fc_final)))
    return {
        "wa": wa.astype(jnp.bfloat16),
        "wb": wb.astype(jnp.bfloat16),
        "bh1": jnp.pad(b1, (0, Hp - fc_final)).reshape(1, Hp).astype(jnp.float32),
        "wh2": jnp.pad(jnp.transpose(w2),
                       ((0, Hp - fc_final), (0, Op - num_sources))).astype(jnp.bfloat16),
        "bh2": jnp.pad(b2, (0, Op - num_sources)).reshape(1, Op).astype(jnp.float32),
        "Op": Op,
        "n_out": num_sources,
    }


# ================================================================ forward passes
def _bottleneck_forward(x, blk):
    """x: (N,H,W,Cinp) bf16 with channels padded to a 128-multiple."""
    N, H, W, Cinp = x.shape
    s = blk["stride"]
    c2 = blk["c2"]

    # conv1 (1x1) + BN + ReLU
    y1 = run_matmul(x.reshape(N * H * W, Cinp), blk["c1"], relu=True)
    y1 = y1.reshape(N, H, W, c2["Wp"])

    # residual branch (downsample conv or identity)
    if "ds" in blk:
        xs = x if s == 1 else x[:, ::s, ::s, :]
        res = run_matmul(xs.reshape(-1, Cinp), blk["ds"], relu=False)
    else:
        res = x.reshape(N * H * W, Cinp)        # stride==1 and Cinp==Coutp here

    # conv2 (3x3 grouped) + conv3 (1x1) + residual add + ReLU, fused in one kernel
    taps, Ho, Wo = _im2col_taps(y1, 3, 3, s, 1)              # (Mo, 9, Wp)
    Mo = N * Ho * Wo
    Mp = _mp_of(Mo)
    Cn, cw, cwo = c2["Cn"], c2["cw"], c2["cwo"]
    taps = _pad_m(taps, Mp)
    p = taps.reshape(Mp, 9, Cn, cw).transpose(2, 0, 1, 3).reshape(Cn, Mp, 9 * cw)
    r = _pad_m(res, Mp)
    out = _conv23_call(Cn, Mp, 9 * cw, cwo, c2["Wp"], blk["Coutp"], blk["tn3"])(
        p, c2["w2"], c2["s2"], blk["w3"], blk["s3"], r)
    out = out[:Mo] if Mp != Mo else out
    return out.reshape(N, Ho, Wo, blk["Coutp"])


def resnet_forward(x_nhwc, p):
    """Stem + maxpool + 4 bottleneck stages -> final feature maps (bf16)."""
    N, H, W, C = x_nhwc.shape
    taps, Ho, Wo = _im2col_taps(x_nhwc, 7, 7, 2, 3)          # (M, 49, C)
    x = run_matmul(taps.reshape(N * Ho * Wo, 49 * C), p["stem"], relu=True)
    x = x.reshape(N, Ho, Wo, x.shape[-1])
    x = maxpool_3x3_s2_p1(x)
    for blocks in p["layers"]:
        for blk in blocks:
            x = _bottleneck_forward(x, blk)
    return x


def radio_multi_source_forward(image_nchw, data_nchw, params, config):
    img = jnp.transpose(image_nchw, (0, 2, 3, 1)).astype(jnp.bfloat16)   # NCHW -> NHWC
    dat = jnp.transpose(data_nchw, (0, 2, 3, 1)).astype(jnp.bfloat16)
    f1 = resnet_forward(img, params["cnn"])          # ResNeXt-101 32x8d branch
    f2 = resnet_forward(dat, params["cnn2"])         # ResNet-50 branch
    return tail_forward(f1, f2, params, config["act"])


# ================================================================ main
if __name__ == "__main__":
    kg = _KeyGen(jax.random.PRNGKey(0))

    num_image_layers = 4
    num_sources = 3
    config = {"fc_out": 32, "fc_final": 16, "act": "relu"}

    params = {
        # cnn  = ResNet(Bottleneck, [3,4,23,3], groups=32, width_per_group=8)
        "cnn": make_resnet_params(kg, num_image_layers, [3, 4, 23, 3],
                                  groups=32, base_width=8, fc_out=config["fc_out"]),
        # cnn2 = ResNet(Bottleneck, [3,4,6,3]) (defaults: groups=1, width_per_group=64)
        "cnn2": make_resnet_params(kg, num_image_layers, [3, 4, 6, 3],
                                   groups=1, base_width=64, fc_out=config["fc_out"]),
    }
    params["head"] = make_head_params(kg, config["fc_out"], config["fc_final"], num_sources)

    image = jax.random.normal(kg(), (2, num_image_layers, 16, 16), jnp.float32)
    data = jax.random.normal(kg(), (2, num_image_layers, 16, 16), jnp.float32)

    out = radio_multi_source_forward(image, data, params, config)
    out = jax.block_until_ready(out)
    assert out.shape == (2, num_sources), out.shape
    assert bool(jnp.all(jnp.isfinite(out)))
    print("KERNEL_OK")
</pallas_src>

<mosaic_0001>
module attributes {stable_mosaic.version = 11 : i64} {
  func.func @kernel(%arg0: i32, %arg1: memref<128x256xbf16, #tpu.memory_space<vmem>>, %arg2: memref<256x128xbf16, #tpu.memory_space<vmem>>, %arg3: memref<1x128xf32, #tpu.memory_space<vmem>>, %arg4: memref<128x128xbf16, #tpu.memory_space<vmem>>) attributes {dimension_semantics = [#tpu.dimension_semantics<parallel>], iteration_bounds = array<i64: 1>, scalar_prefetch = 0 : i64, scratch_operands = 0 : i64, tpu.core_type = #tpu.core_type<tc>, window_params = [{pipeline_mode = #tpu.pipeline_mode<synchronous>, transform_indices = @transform_0, window_bounds = array<i64: 128, 256>}, {transform_indices = @transform_1, window_bounds = array<i64: 256, 128>}, {transform_indices = @transform_2, window_bounds = array<i64: 1, 128>}, {transform_indices = @transform_3, window_bounds = array<i64: 128, 128>}]} {
    %c0 = arith.constant 0 : index
    %c0_0 = arith.constant 0 : index
    %0 = vector.load %arg1[%c0, %c0_0] : memref<128x256xbf16, #tpu.memory_space<vmem>>, vector<128x256xbf16>
    %c0_1 = arith.constant 0 : index
    %c0_2 = arith.constant 0 : index
    %1 = vector.load %arg2[%c0_1, %c0_2] : memref<256x128xbf16, #tpu.memory_space<vmem>>, vector<256x128xbf16>
    %cst = arith.constant dense<0.000000e+00> : vector<128x128xf32>
    %2 = tpu.matmul %0, %1, %cst {dimension_numbers = #tpu.dot_dimension_numbers<[1], [0], [0], [1], [0, 0, 1, 1], [], []>} : vector<128x256xbf16>, vector<256x128xbf16>, vector<128x128xf32> -> vector<128x128xf32>
    %c0_3 = arith.constant 0 : index
    %c0_4 = arith.constant 0 : index
    %3 = vector.load %arg3[%c0_3, %c0_4] : memref<1x128xf32, #tpu.memory_space<vmem>>, vector<1x128xf32>
    %4 = vector.broadcast %3 : vector<1x128xf32> to vector<128x128xf32>
    %5 = arith.addf %2, %4 : vector<128x128xf32>
    %cst_5 = arith.constant 0.000000e+00 : f32
    %6 = vector.broadcast %cst_5 : f32 to vector<128x128xf32>
    %7 = arith.maximumf %5, %6 : vector<128x128xf32>
    %8 = arith.truncf %7 : vector<128x128xf32> to vector<128x128xbf16>
    %c0_6 = arith.constant 0 : index
    %c0_7 = arith.constant 0 : index
    %9 = vector.load %arg4[%c0_6, %c0_7] : memref<128x128xbf16, #tpu.memory_space<vmem>>, vector<128x128xbf16>
    tpu.vector_store %arg4[%c0_6, %c0_7], %8 {strides = array<i32>} : memref<128x128xbf16, #tpu.memory_space<vmem>>, vector<128x128xbf16>,
    return
  }
  func.func @transform_0(%arg0: i32) -> (i32, i32) {
    %c0_i32 = arith.constant 0 : i32
    %c0_i32_0 = arith.constant 0 : i32
    %c0_i32_1 = arith.constant 0 : i32
    return %c0_i32, %c0_i32_0 : i32, i32
  }
  func.func @transform_1(%arg0: i32) -> (i32, i32) {
    %c0_i32 = arith.constant 0 : i32
    %c0_i32_0 = arith.constant 0 : i32
    return %c0_i32, %arg0 : i32, i32
  }
  func.func @transform_2(%arg0: i32) -> (i32, i32) {
    %c0_i32 = arith.constant 0 : i32
    %c0_i32_0 = arith.constant 0 : i32
    return %c0_i32, %arg0 : i32, i32
  }
  func.func @transform_3(%arg0: i32) -> (i32, i32) {
    %c0_i32 = arith.constant 0 : i32
    %c0_i32_0 = arith.constant 0 : i32
    return %c0_i32, %arg0 : i32, i32
  }
}

</mosaic_0001>

<bundles_post_ra>
// kernel: tpu_custom_call.1
= control target key start
LH: loop header
LB: loop body
LE: loop exit
PB: predicated region body
PF: predicated region fallthrough
CT: control target
= control target key end

     0   :  { %8 = vsyncpa [#allocation3], 0  ;;  %s887_s0 = inlined_call_operand.hbm [shape: bf16[128,256], index: 0, kind: input, shape index: {}]   ;;  %s888_s1 = inlined_call_operand.hbm [shape: bf16[256,128], index: 1, kind: input, shape index: {}]   ;;  %s889_s2 = inlined_call_operand.vmem [shape: f32[1,128], index: 2, kind: input, shape index: {}]   ;;  %s890_s3 = inlined_call_operand.hbm [shape: bf16[128,128], index: 3, kind: output, shape index: {}]  }
   0x1   :  { %9 = vsyncpa [#allocation6], 0 }
   0x2   :  { %10 = vsyncpa [#allocation4], 0  ;;  %s797_s12 = smov [#allocation2]   ;;  %s725_s16 = scalar_lea.hbm %s887_s0, 2048 }
   0x3   :  { %s16_s13 = sshll.u32 %s797_s12, 4  ;;  %p726_p0 = scmp.ne.s32.totalorder %s887_s0, %s725_s16  ;;  %s17_s13 = int_to_ptr.vmem [resolvable:$true] %s16_s13 }
   0x4   :  { %p729_p1 = scmp.lt.u32.totalorder %s725_s16, %s887_s0 }
   0x6   :  { %p731_p2 = pnand %p729_p1, %p726_p0 }
   0x8   :  { %734 = shalt.err (!%p731_p2)
}
   0x9   :  { %s735_s21 = scalar_lea.vmem %s17_s13, 2048  ;;  %p740_p4 = scmp.lt.s32.totalorder %s17_s13, %s17_s13 }
   0xa   :  { %p736_p3 = scmp.ne.s32.totalorder %s17_s13, %s735_s21  ;;  %p741_p5 = scmp.lt.s32.totalorder %s735_s21, %s735_s21 }
   0xc   :  { %p742_p6 = por %p741_p5, %p740_p4 }
   0xe   :  { %p743_p7 = pnand %p742_p6, %p736_p3 }
  0x10   :  { %746 = shalt.err (!%p743_p7)
}
  0x11   :  { %s798_s22 = smov 128   ;;  %s799_s23 = smov 8  }
  0x12   :  { %22 = dma.hbm_to_vmem [thread:$0]  %s887_s0, 2048, %s17_s13, [#allocation3], %s798_s22, %s798_s22, %s799_s23  }
  0x13   :  { %s800_s26 = smov [#allocation5]   ;;  %s747_s30 = scalar_lea.hbm %s888_s1, 2048 }
  0x14   :  { %s28_s27 = sshll.u32 %s800_s26, 4  ;;  %p748_p8 = scmp.ne.s32.totalorder %s888_s1, %s747_s30  ;;  %s29_s27 = int_to_ptr.vmem [resolvable:$true] %s28_s27 }
  0x15   :  { %p751_p9 = scmp.lt.u32.totalorder %s747_s30, %s888_s1 }
  0x17   :  { %p753_p10 = pnand %p751_p9, %p748_p8 }
  0x19   :  { %756 = shalt.err (!%p753_p10)
}
  0x1a   :  { %s757_s8 = scalar_lea.vmem %s29_s27, 2048  ;;  %p762_p12 = scmp.lt.s32.totalorder %s29_s27, %s29_s27 }
  0x1b   :  { %p758_p11 = scmp.ne.s32.totalorder %s29_s27, %s757_s8  ;;  %p763_p13 = scmp.lt.s32.totalorder %s757_s8, %s757_s8 }
  0x1d   :  { %p764_p0 = por %p763_p13, %p762_p12 }
  0x1f   :  { %p765_p1 = pnand %p764_p0, %p758_p11 }
  0x21   :  { %768 = shalt.err (!%p765_p1)
}
  0x22   :  { %s801_s0 = smov 64   ;;  %s802_s9 = smov 4  }
  0x23   :  { %34 = dma.hbm_to_vmem [thread:$0]  %s888_s1, 2048, %s29_s27, [#allocation6], %s801_s0, %s801_s0, %s802_s9  }
  0x24   :  { %791 = dma.done.wait [#allocation3], 2048  }
  0x25   :  { %792 = vsyncadd [#allocation3], 4294965248 }
  0x26   :  { %793 = dma.done.wait [#allocation6], 2048  }
  0x27   :  { %794 = vsyncadd [#allocation6], 4294965248  ;;  %v685_v0 = vld [vmem:[#allocation5 + $0x40] sm:$0xff]   ;;  %v687_v2 = vld [vmem:[#allocation5 + $0x48] sm:$0xff]  }
  0x28   :  { %v686_v1 = vld [vmem:[#allocation5] sm:$0xff]   ;;  %598 = vmatprep.subr.bf16.mxu0 %v685_v0  ;;  %662 = vmatprep.subr.bf16.mxu1 %v685_v0  ;;  %v688_v3 = vld [vmem:[#allocation5 + $0x8] sm:$0xff]   ;;  %v689_v4 = vld [vmem:[#allocation5 + $0x50] sm:$0xff]  }
  0x29   :  { %599 = vmatpush3.bf16.msra.mxu0 %v686_v1  ;;  %670 = vmatpush3.bf16.msra.mxu1 %v686_v1  ;;  %v690_v5 = vld [vmem:[#allocation5 + $0x10] sm:$0xff]   ;;  %v691_v6 = vld [vmem:[#allocation5 + $0x58] sm:$0xff]   ;;  %v693_v8 = vld [vmem:[#allocation5 + $0x60] sm:$0xff]  }
  0x2a   :  { %600 = vmatprep.subr.bf16.mxu0 %v687_v2  ;;  %663 = vmatprep.subr.bf16.mxu1 %v687_v2  ;;  %v692_v7 = vld [vmem:[#allocation5 + $0x18] sm:$0xff]   ;;  %v694_v9 = vld [vmem:[#allocation5 + $0x20] sm:$0xff]   ;;  %v695_v10 = vld [vmem:[#allocation5 + $0x68] sm:$0xff]  }
  0x2b   :  { %v703_v11 = vld [vmem:[#allocation2 + $0x4] ss:$8 sps:$4 sm:$0xff]   ;;  %v697_v14 = vld [vmem:[#allocation5 + $0x70] sm:$0xff]   ;;  %v699_v16 = vld [vmem:[#allocation5 + $0x78] sm:$0xff]  }
  0x2c   :  { %v706_v12 = vld [vmem:[#allocation2 + $0x44] ss:$8 sps:$4 sm:$0xff]   ;;  %307 = vmatprep.mubr.bf16.mxu0 %v703_v11  ;;  %v698_v15 = vld [vmem:[#allocation5 + $0x30] sm:$0xff]   ;;  %v700_v17 = vld [vmem:[#allocation5 + $0x38] sm:$0xff]  }
  0x2d   :  { %601 = vmatpush3.bf16.msra.mxu0 %v688_v3  ;;  %671 = vmatpush3.bf16.msra.mxu1 %v688_v3  ;;  %v696_v13 = vld [vmem:[#allocation5 + $0x28] sm:$0xff]   ;;  %v707_v20 = vld [vmem:[#allocation2 + $0x14] ss:$8 sps:$4 sm:$0xff]   ;;  %v711_v22 = vld [vmem:[#allocation2 + $0x10] ss:$8 sps:$4 sm:$0xff]  }
  0x2e   :  { %602 = vmatprep.subr.bf16.mxu0 %v689_v4  ;;  %664 = vmatprep.subr.bf16.mxu1 %v689_v4  ;;  %v701_v18 = vld [vmem:[#allocation2] ss:$8 sps:$4 sm:$0xff]   ;;  %v709_v21 = vld [vmem:[#allocation2 + $0x54] ss:$8 sps:$4 sm:$0xff]   ;;  %v712_v23 = vld [vmem:[#allocation2 + $0x50] ss:$8 sps:$4 sm:$0xff]  }
  0x2f   :  { %339 = vmatprep.mubr.bf16.mxu1 %v706_v12  ;;  %v704_v19 = vld [vmem:[#allocation2 + $0x40] ss:$8 sps:$4 sm:$0xff]   ;;  %v713_v24 = vld [vmem:[#allocation2 + $0x24] ss:$8 sps:$4 sm:$0xff]   ;;  %v719_v28 = vld [vmem:[#allocation2 + $0x34] ss:$8 sps:$4 sm:$0xff]  }
  0x30   :  { %v715_v25 = vld [vmem:[#allocation2 + $0x64] ss:$8 sps:$4 sm:$0xff]   ;;  %v717_v26 = vld [vmem:[#allocation2 + $0x20] ss:$8 sps:$4 sm:$0xff]   ;;  %v721_v29 = vld [vmem:[#allocation2 + $0x74] ss:$8 sps:$4 sm:$0xff]  }
  0x31   :  { %603 = vmatpush3.bf16.msra.mxu0 %v690_v5  ;;  %672 = vmatpush3.bf16.msra.mxu1 %v690_v5  ;;  %v718_v27 = vld [vmem:[#allocation2 + $0x60] ss:$8 sps:$4 sm:$0xff]   ;;  %v723_v30 = vld [vmem:[#allocation2 + $0x30] ss:$8 sps:$4 sm:$0xff]  }
  0x32   :  { %604 = vmatprep.subr.bf16.mxu0 %v691_v6  ;;  %665 = vmatprep.subr.bf16.mxu1 %v691_v6  ;;  %v724_v31 = vld [vmem:[#allocation2 + $0x70] ss:$8 sps:$4 sm:$0xff]   ;;  %v854_v34 = vld [vmem:[%s889_s2] ss:$0 sm:$0xff]  ;;  %s803_s2 = smov [#allocation7]  }
  0x33   :  { %s473_s13 = sshll.u32 %s803_s2, 4  ;;  %s474_s13 = int_to_ptr.vmem [resolvable:$true] %s473_s13 }
  0x34   :  { %s769_s14 = scalar_lea.vmem %s474_s13, 1024  ;;  %p774_p3 = scmp.lt.s32.totalorder %s474_s13, %s474_s13 }
  0x35   :  { %605 = vmatpush3.bf16.msra.mxu0 %v692_v7  ;;  %673 = vmatpush3.bf16.msra.mxu1 %v692_v7  ;;  %p770_p2 = scmp.ne.s32.totalorder %s474_s13, %s769_s14  ;;  %p775_p4 = scmp.lt.s32.totalorder %s769_s14, %s769_s14 }
  0x36   :  { %606 = vmatprep.subr.bf16.mxu0 %v693_v8  ;;  %666 = vmatprep.subr.bf16.mxu1 %v693_v8 }
  0x37   :  { %p776_p5 = por %p775_p4, %p774_p3 }
  0x39   :  { %607 = vmatpush3.bf16.msra.mxu0 %v694_v9  ;;  %674 = vmatpush3.bf16.msra.mxu1 %v694_v9  ;;  %p777_p6 = pnand %p776_p5, %p770_p2 }
  0x3a   :  { %608 = vmatprep.subr.bf16.mxu0 %v695_v10  ;;  %667 = vmatprep.subr.bf16.mxu1 %v695_v10 }
  0x3d   :  { %609 = vmatpush3.bf16.msra.mxu0 %v696_v13  ;;  %675 = vmatpush3.bf16.msra.mxu1 %v696_v13 }
  0x3e   :  { %610 = vmatprep.subr.bf16.mxu0 %v697_v14  ;;  %668 = vmatprep.subr.bf16.mxu1 %v697_v14 }
  0x41   :  { %611 = vmatpush3.bf16.msra.mxu0 %v698_v15  ;;  %676 = vmatpush3.bf16.msra.mxu1 %v698_v15 }
  0x42   :  { %612 = vmatprep.subr.bf16.mxu0 %v699_v16  ;;  %669 = vmatprep.subr.bf16.mxu1 %v699_v16 }
  0x45   :  { %613 = vmatpush3.bf16.msra.mxu0 %v700_v17  ;;  %677 = vmatpush3.bf16.msra.mxu1 %v700_v17 }
  0x48   :  { %308 = vmatmul.mubr.bf16.vlgmr.msra.gmra.mrb[0].mxu0 %v701_v18  ;;  %340 = vmatmul.mubr.bf16.vlgmr.msra.gmra.mrb[0].mxu1 %v704_v19 }
  0x49   :  { %315 = vmatprep.mubr.bf16.mxu0 %v707_v20  ;;  %347 = vmatprep.mubr.bf16.mxu1 %v709_v21 }
  0x50   :  { %316 = vmatmul.mubr.bf16.gmra.mrb[4].mxu0 %v711_v22  ;;  %348 = vmatmul.mubr.bf16.gmra.mrb[4].mxu1 %v712_v23 }
  0x51   :  { %323 = vmatprep.mubr.bf16.mxu0 %v713_v24  ;;  %355 = vmatprep.mubr.bf16.mxu1 %v715_v25 }
  0x58   :  { %324 = vmatmul.mubr.bf16.gmra.mrb[8].mxu0 %v717_v26  ;;  %356 = vmatmul.mubr.bf16.gmra.mrb[8].mxu1 %v718_v27 }
  0x59   :  { %331 = vmatprep.mubr.bf16.mxu0 %v719_v28  ;;  %363 = vmatprep.mubr.bf16.mxu1 %v721_v29 }
  0x60   :  { %332 = vmatmul.mubr.bf16.gmra.mrb[12].mxu0 %v723_v30  ;;  %364 = vmatmul.mubr.bf16.gmra.mrb[12].mxu1 %v724_v31 }
 0x11b   :  { %v614_v32 = vpop.f32.mrb[0].mxu0  ;;  %v638_v33 = vpop.f32.mrb[0].mxu1 }
 0x11c   :  { %v615_v35 = vpop.f32.mrb[1].mxu0  ;;  %v639_v36 = vpop.f32.mrb[1].mxu1 }
 0x11d   :  { %v616_v37 = vadd.f32 %v615_v35, %v614_v32  ;;  %v640_v38 = vadd.f32 %v639_v36, %v638_v33  ;;  %v617_v39 = vpop.f32.mrb[2].mxu0  ;;  %v641_v40 = vpop.f32.mrb[2].mxu1 }
 0x11e   :  { %v618_v41 = vpop.f32.mrb[3].mxu0  ;;  %v642_v42 = vpop.f32.mrb[3].mxu1 }
 0x11f   :  { %v310_v43 = vadd.f32 %v616_v37, %v854_v34  ;;  %v342_v44 = vadd.f32 %v640_v38, %v854_v34  ;;  %v619_v45 = vadd.f32 %v618_v41, %v617_v39  ;;  %v643_v46 = vadd.f32 %v642_v42, %v641_v40 }
 0x121   :  { %v313_v47 = vadd.f32 %v619_v45, %v854_v34  ;;  %v345_v48 = vadd.f32 %v643_v46, %v854_v34  ;;  %v372_v49 = vmax.f32 %v310_v43, 0.0  ;;  %v380_v50 = vmax.f32 %v342_v44, 0.0 }
 0x123   :  { %v373_v51 = vmax.f32 %v313_v47, 0.0  ;;  %v381_v52 = vmax.f32 %v345_v48, 0.0  ;;  %v620_v53 = vpop.f32.mrb[4].mxu0  ;;  %v644_v54 = vpop.f32.mrb[4].mxu1 }
 0x124   :  { %v621_v55 = vpop.f32.mrb[5].mxu0  ;;  %v645_v56 = vpop.f32.mrb[5].mxu1 }
 0x125   :  { %v554_v57 = vpack.c.bf16 %v373_v51, %v372_v49  ;;  %v574_v58 = vpack.c.bf16 %v381_v52, %v380_v50  ;;  %v622_v59 = vadd.f32 %v621_v55, %v620_v53  ;;  %v646_v60 = vadd.f32 %v645_v56, %v644_v54  ;;  %v623_v61 = vpop.f32.mrb[6].mxu0  ;;  %v647_v62 = vpop.f32.mrb[6].mxu1 }
 0x126   :  { %v624_v63 = vpop.f32.mrb[7].mxu0  ;;  %v648_v0 = vpop.f32.mrb[7].mxu1 }
 0x127   :  { %555 = vst [vmem:[#allocation7] sm:$0xff] %v554_v57   ;;  %594 = vst [vmem:[#allocation7 + $0x20] sm:$0xff] %v574_v58   ;;  %v318_v1 = vadd.f32 %v622_v59, %v854_v34  ;;  %v350_v2 = vadd.f32 %v646_v60, %v854_v34  ;;  %v625_v3 = vadd.f32 %v624_v63, %v623_v61 }
 0x128   :  { %v649_v4 = vadd.f32 %v648_v0, %v647_v62 }
 0x129   :  { %v321_v5 = vadd.f32 %v625_v3, %v854_v34  ;;  %v374_v7 = vmax.f32 %v318_v1, 0.0  ;;  %v382_v8 = vmax.f32 %v350_v2, 0.0 }
 0x12a   :  { %v353_v6 = vadd.f32 %v649_v4, %v854_v34 }
 0x12b   :  { %v375_v9 = vmax.f32 %v321_v5, 0.0  ;;  %v626_v11 = vpop.f32.mrb[8].mxu0  ;;  %v650_v12 = vpop.f32.mrb[8].mxu1 }
 0x12c   :  { %v383_v10 = vmax.f32 %v353_v6, 0.0  ;;  %v627_v13 = vpop.f32.mrb[9].mxu0  ;;  %v651_v14 = vpop.f32.mrb[9].mxu1 }
 0x12d   :  { %v559_v15 = vpack.c.bf16 %v375_v9, %v374_v7  ;;  %v628_v17 = vadd.f32 %v627_v13, %v626_v11  ;;  %v652_v18 = vadd.f32 %v651_v14, %v650_v12  ;;  %v629_v19 = vpop.f32.mrb[10].mxu0  ;;  %v653_v20 = vpop.f32.mrb[10].mxu1 }
 0x12e   :  { %v579_v16 = vpack.c.bf16 %v383_v10, %v382_v8  ;;  %v630_v21 = vpop.f32.mrb[11].mxu0  ;;  %v654_v22 = vpop.f32.mrb[11].mxu1 }
 0x12f   :  { %591 = vst [vmem:[#allocation7 + $0x8] sm:$0xff] %v559_v15   ;;  %v326_v23 = vadd.f32 %v628_v17, %v854_v34  ;;  %v358_v24 = vadd.f32 %v652_v18, %v854_v34  ;;  %v631_v25 = vadd.f32 %v630_v21, %v629_v19  ;;  %v655_v26 = vadd.f32 %v654_v22, %v653_v20 }
 0x130   :  { %595 = vst [vmem:[#allocation7 + $0x28] sm:$0xff] %v579_v16  }
 0x131   :  { %v329_v27 = vadd.f32 %v631_v25, %v854_v34  ;;  %v361_v28 = vadd.f32 %v655_v26, %v854_v34  ;;  %v376_v29 = vmax.f32 %v326_v23, 0.0  ;;  %v384_v30 = vmax.f32 %v358_v24, 0.0 }
 0x133   :  { %v377_v31 = vmax.f32 %v329_v27, 0.0  ;;  %v385_v32 = vmax.f32 %v361_v28, 0.0  ;;  %v632_v33 = vpop.f32.mrb[12].mxu0  ;;  %v656_v35 = vpop.f32.mrb[12].mxu1 }
 0x134   :  { %v633_v36 = vpop.f32.mrb[13].mxu0  ;;  %v657_v37 = vpop.f32.mrb[13].mxu1 }
 0x135   :  { %v564_v38 = vpack.c.bf16 %v377_v31, %v376_v29  ;;  %v584_v39 = vpack.c.bf16 %v385_v32, %v384_v30  ;;  %v634_v40 = vadd.f32 %v633_v36, %v632_v33  ;;  %v658_v41 = vadd.f32 %v657_v37, %v656_v35  ;;  %v635_v42 = vpop.f32.mrb[14].mxu0  ;;  %v659_v43 = vpop.f32.mrb[14].mxu1 }
 0x136   :  { %v636_v44 = vpop.f32.mrb[15].mxu0  ;;  %v660_v45 = vpop.f32.mrb[15].mxu1 }
 0x137   :  { %592 = vst [vmem:[#allocation7 + $0x10] sm:$0xff] %v564_v38   ;;  %596 = vst [vmem:[#allocation7 + $0x30] sm:$0xff] %v584_v39   ;;  %v334_v46 = vadd.f32 %v634_v40, %v854_v34  ;;  %v366_v47 = vadd.f32 %v658_v41, %v854_v34  ;;  %v637_v48 = vadd.f32 %v636_v44, %v635_v42 }
 0x138   :  { %v661_v49 = vadd.f32 %v660_v45, %v659_v43 }
 0x139   :  { %v337_v50 = vadd.f32 %v637_v48, %v854_v34  ;;  %v378_v52 = vmax.f32 %v334_v46, 0.0  ;;  %v386_v53 = vmax.f32 %v366_v47, 0.0 }
 0x13a   :  { %v369_v51 = vadd.f32 %v661_v49, %v854_v34 }
 0x13b   :  { %v379_v54 = vmax.f32 %v337_v50, 0.0 }
 0x13c   :  { %v387_v55 = vmax.f32 %v369_v51, 0.0 }
 0x13d   :  { %v569_v56 = vpack.c.bf16 %v379_v54, %v378_v52 }
 0x13e   :  { %v589_v57 = vpack.c.bf16 %v387_v55, %v386_v53 }
 0x13f   :  { %593 = vst [vmem:[#allocation7 + $0x18] sm:$0xff] %v569_v56  }
 0x140   :  { %597 = vst [vmem:[#allocation7 + $0x38] sm:$0xff] %v589_v57  }
 0x141   :  { %780 = shalt.err (!%p777_p6)
}
 0x142   :  { %s781_s17 = scalar_lea.hbm %s890_s3, 1024 }
 0x143   :  { %p782_p7 = scmp.ne.s32.totalorder %s890_s3, %s781_s17  ;;  %p785_p8 = scmp.lt.u32.totalorder %s781_s17, %s890_s3 }
 0x145   :  { %p787_p9 = pnand %p785_p8, %p782_p7 }
 0x147   :  { %790 = shalt.err (!%p787_p9)
}
 0x148   :  { %479 = dma.vmem_to_hbm [thread:$0]  %s474_s13, 1024, %s890_s3, [#allocation4], %s801_s0, %s801_s0, %s802_s9  }
 0x149   :  { %795 = dma.done.wait [#allocation4], 1024  }
 0x14a   :  { %796 = vsyncadd [#allocation4], 4294966272 }
 0x14b   :  { %483 = vsyncpa [#allocation3], 1 }
 0x14c   :  { %484 = vsyncpa [#allocation6], 1 }
 0x14d   :  { %485 = vsyncpa [#allocation4], 1 }

</bundles_post_ra>
